<compile_context>
chip_gen: v6e
topology: v6e:2x2x1
jax: 0.10.0
libtpu: 0.0.40
codegen_flags: <defaults>
</compile_context>

<pallas_src>
import math

import jax
import jax.numpy as jnp
from jax.experimental import pallas as pl
from jax.experimental.pallas import tpu as pltpu


def _broadcast_kernel(const_ref, out_ref):
    # const_ref: (1, tile_f)      learned-constant tile (VMEM, invariant over rows)
    # out_ref  : (chunk, tile_f)  lane-dense output block for this grid step
    out_ref[...] = jnp.broadcast_to(const_ref[...], out_ref.shape)


def constant_input_forward(x, const, *, vmem_block_bytes=6 << 20):
    """Pallas equivalent of ConstantInput.forward.

    x     : any array whose leading dim is the batch size (values unused)
    const : (1, C, S, S) learned constant parameter
    returns (B, C, S, S) = const repeated B times along batch.
    """
    batch = x.shape[0]
    _, c, s1, s2 = const.shape
    feat = c * s1 * s2
    dtype = const.dtype
    itemsize = jnp.dtype(dtype).itemsize

    # dtype-aware sublane packing (f32: 8, bf16: 16, int8/fp8: 32)
    sublane = max(8, 32 // itemsize)

    # Lane folding: make the lane axis a multiple of 128 when possible by folding
    # g consecutive batch rows into the lane dim (exact for contiguous NCHW).
    g = 1
    if feat % 128 != 0:
        cand = 128 // math.gcd(feat, 128)
        if cand > 1 and batch % cand == 0:
            g = cand
    rows_total = batch // g
    lane = feat * g

    const_flat = const.reshape(1, feat)
    if g > 1:
        const_flat = jnp.tile(const_flat, (1, g))  # tiny, one-time

    # ---- block sizing against the VMEM budget -------------------------------
    row_bytes = lane * itemsize
    if row_bytes * sublane <= vmem_block_bytes:
        # Common case: full lane width, tile rows only.
        tile_f = lane
        rows_fit = vmem_block_bytes // row_bytes
        max_rows = max(sublane, (rows_fit // sublane) * sublane)
    else:
        # Huge constant: tile the feature axis too (prevents VMEM OOM).
        tile_f = max(128, (vmem_block_bytes // (sublane * itemsize) // 128) * 128)
        max_rows = sublane

    if rows_total <= max_rows:
        chunk = rows_total
        # Megacore: split non-trivial outputs into >=2 row blocks so both v7x
        # TensorCores write and writeback overlaps the in-VMEM fill.
        total_bytes = rows_total * lane * itemsize
        if total_bytes > (2 << 20) and rows_total >= 2 * sublane:
            half = -(-rows_total // 2)                    # ceil(rows/2)
            chunk = -(-half // sublane) * sublane         # round up to sublane
    else:
        chunk = max_rows
        # Prefer a chunk that divides rows_total (avoids a ragged masked last block),
        # but don't shrink below half the budget-sized chunk.
        lo = max(sublane, (max_rows // 2 // sublane) * sublane)
        for cand2 in range(max_rows, lo - 1, -sublane):
            if rows_total % cand2 == 0:
                chunk = cand2
                break

    grid = (pl.cdiv(rows_total, chunk), pl.cdiv(lane, tile_f))

    out_block_bytes = chunk * tile_f * itemsize
    const_block_bytes = tile_f * itemsize
    vmem_limit = min(
        48 << 20,
        max(16 << 20, 2 * out_block_bytes + 2 * const_block_bytes + (2 << 20)),
    )

    out_bytes = rows_total * lane * itemsize
    cost = pl.CostEstimate(
        flops=0,
        transcendentals=0,
        bytes_accessed=out_bytes + feat * itemsize,
    )

    out_flat = pl.pallas_call(
        _broadcast_kernel,
        out_shape=jax.ShapeDtypeStruct((rows_total, lane), dtype),
        grid_spec=pltpu.PrefetchScalarGridSpec(
            num_scalar_prefetch=0,
            grid=grid,
            in_specs=[
                # Constant tile: same block for every row step -> stays VMEM-resident
                # across the row axis; only re-DMA'd when the feature axis is tiled.
                pl.BlockSpec((1, tile_f), lambda i, j: (0, j)),
            ],
            # Output: large lane-dense (chunk, tile_f) block per grid step.
            out_specs=pl.BlockSpec((chunk, tile_f), lambda i, j: (i, j)),
        ),
        compiler_params=pltpu.CompilerParams(
            dimension_semantics=("parallel", "parallel"),
            vmem_limit_bytes=vmem_limit,
        ),
        cost_estimate=cost,
    )(const_flat)

    # Metadata-only reshape back to the PyTorch NCHW layout.
    return out_flat.reshape(batch, c, s1, s2)


if __name__ == "__main__":
    key = jax.random.PRNGKey(0)
    k_const, k_x = jax.random.split(key)

    channel = 4
    size = 4
    batch = 2

    # Matches nn.Parameter(torch.randn(1, C, S, S)) shape.
    const = jax.random.normal(k_const, (1, channel, size, size), dtype=jnp.float32)

    # Example "input" — only its batch dim is used, mirroring the PyTorch module.
    x = jax.random.normal(k_x, (batch, channel, 16, 16), dtype=jnp.float32)

    out = constant_input_forward(x, const)
    out = jax.block_until_ready(out)

    # Correctness check vs. pure-JAX reference (repeat along batch).
    ref = jnp.broadcast_to(const, (batch, channel, size, size))
    assert out.shape == (batch, channel, size, size)
    assert jnp.allclose(out, ref)

    print("KERNEL_OK")
</pallas_src>

<mosaic_0001>
module attributes {stable_mosaic.version = 11 : i64} {
  func.func @_broadcast_kernel(%arg0: i32, %arg1: i32, %arg2: memref<1x128xf32, #tpu.memory_space<vmem>>, %arg3: memref<1x128xf32, #tpu.memory_space<vmem>>) attributes {dimension_semantics = [#tpu.dimension_semantics<parallel>, #tpu.dimension_semantics<parallel>], iteration_bounds = array<i64: 1, 1>, scalar_prefetch = 0 : i64, scratch_operands = 0 : i64, tpu.core_type = #tpu.core_type<tc>, window_params = [{transform_indices = @transform_0, window_bounds = array<i64: 1, 128>}, {transform_indices = @transform_1, window_bounds = array<i64: 1, 128>}]} {
    %c0 = arith.constant 0 : index
    %c0_0 = arith.constant 0 : index
    %0 = vector.load %arg2[%c0, %c0_0] : memref<1x128xf32, #tpu.memory_space<vmem>>, vector<1x128xf32>
    %c0_1 = arith.constant 0 : index
    %c0_2 = arith.constant 0 : index
    %1 = vector.load %arg3[%c0_1, %c0_2] : memref<1x128xf32, #tpu.memory_space<vmem>>, vector<1x128xf32>
    tpu.vector_store %arg3[%c0_1, %c0_2], %0 {strides = array<i32>} : memref<1x128xf32, #tpu.memory_space<vmem>>, vector<1x128xf32>,
    return
  }
  func.func @transform_0(%arg0: i32, %arg1: i32) -> (i32, i32) {
    %c0_i32 = arith.constant 0 : i32
    %c0_i32_0 = arith.constant 0 : i32
    return %c0_i32, %arg1 : i32, i32
  }
  func.func @transform_1(%arg0: i32, %arg1: i32) -> (i32, i32) {
    %c0_i32 = arith.constant 0 : i32
    return %arg0, %arg1 : i32, i32
  }
}

</mosaic_0001>

<bundles_post_ra>
// kernel: tpu_custom_call.1
= control target key start
LH: loop header
LB: loop body
LE: loop exit
PB: predicated region body
PF: predicated region fallthrough
CT: control target
= control target key end

     0   :  { %6 = vsyncpa [#allocation3], 0  ;;  %s102_s0 = inlined_call_operand.hbm [shape: f32[1,128], index: 0, kind: input, shape index: {}]   ;;  %s103_s1 = inlined_call_operand.hbm [shape: f32[1,128], index: 1, kind: output, shape index: {}]  }
   0x1   :  { %7 = vsyncpa [#allocation4], 0  ;;  %s84_s6 = smov [#allocation2]  }
   0x2   :  { %s14_s7 = sshll.u32 %s84_s6, 4  ;;  %s15_s7 = int_to_ptr.vmem [resolvable:$true] %s14_s7 }
   0x3   :  { %s48_s8 = scalar_lea.vmem %s15_s7, 16  ;;  %s52_s9 = scalar_lea.vmem %s15_s7, 32 }
   0x4   :  { %p49_p0 = scmp.ne.s32.totalorder %s15_s7, %s48_s8  ;;  %p53_p1 = scmp.lt.s32.totalorder %s15_s7, %s15_s7 }
   0x5   :  { %p54_p2 = scmp.lt.s32.totalorder %s52_s9, %s48_s8 }
   0x7   :  { %p55_p3 = por %p54_p2, %p53_p1 }
   0x9   :  { %p56_p4 = pnand %p55_p3, %p49_p0 }
   0xb   :  { %59 = shalt.err (!%p56_p4)
}
   0xc   :  { %17 = dma.hbm_to_vmem [thread:$0]  %s102_s0, 16, %s15_s7, [#allocation3]  }
   0xd   :  { %80 = dma.done.wait [#allocation3], 16  }
   0xe   :  { %81 = vsyncadd [#allocation3], 4294967280  ;;  %s85_s12 = smov [#allocation5]   ;;  %v21_v0 = vld [vmem:[#allocation2] sm:$0x1] }
   0xf   :  { %s29_s13 = sshll.u32 %s85_s12, 4  ;;  %22 = vst [vmem:[#allocation5] sm:$0x1] %v21_v0  ;;  %s30_s13 = int_to_ptr.vmem [resolvable:$true] %s29_s13 }
  0x10   :  { %s60_s14 = scalar_lea.vmem %s30_s13, 16  ;;  %s64_s15 = scalar_lea.vmem %s30_s13, 32 }
  0x11   :  { %p61_p5 = scmp.ne.s32.totalorder %s30_s13, %s60_s14  ;;  %p65_p6 = scmp.lt.s32.totalorder %s30_s13, %s30_s13 }
  0x12   :  { %p66_p7 = scmp.lt.s32.totalorder %s64_s15, %s60_s14 }
  0x14   :  { %p67_p8 = por %p66_p7, %p65_p6 }
  0x16   :  { %p68_p9 = pnand %p67_p8, %p61_p5 }
  0x18   :  { %71 = shalt.err (!%p68_p9)
}
  0x19   :  { %32 = dma.vmem_to_hbm [thread:$0]  %s30_s13, 16, %s103_s1, [#allocation4]  }
  0x1a   :  { %82 = dma.done.wait [#allocation4], 16  }
  0x1b   :  { %83 = vsyncadd [#allocation4], 4294967280 }
  0x1c   :  { %36 = vsyncpa [#allocation3], 1 }
  0x1d   :  { %37 = vsyncpa [#allocation4], 1 }

</bundles_post_ra>
